<compile_context>
chip_gen: v6e
topology: v6e:2x2x1
jax: 0.10.0
libtpu: 0.0.40
codegen_flags: <defaults>
</compile_context>

<pallas_src>
import math

import jax
import jax.numpy as jnp
from jax.experimental import pallas as pl
from jax.experimental.pallas import tpu as pltpu


HIDDEN1 = 64
HIDDEN2 = 32
OUT = 1


def _mlp_kernel(x_ref, w1_ref, b1_ref, w2_ref, b2_ref, w3_ref, b3_ref, o_ref):
    """One batch tile of the fused MLP.  x_ref: (tb, D); o_ref: (1, 1, tb)."""
    # In-kernel cast to the MXU dtype (bf16 when use_bf16=True); x is streamed from
    # HBM in its native dtype, so there is no extra wrapper-side pass over x.
    x = x_ref[...].astype(w1_ref.dtype)                       # (tb, D)

    # ---- Layer 1: Linear(D, 64) + ReLU ----
    # f32 accumulation on the MXU; bias-add + ReLU in f32 on the VPU; the result is
    # written ONCE, directly in the layer-2 operand dtype (single live copy of h1).
    h1 = jnp.dot(x, w1_ref[...], preferred_element_type=jnp.float32)
    h1 = jnp.maximum(h1 + b1_ref[...], 0.0).astype(w2_ref.dtype)   # (tb, 64)
    # Dropout(0.3): identity at inference.

    # ---- Layer 2: Linear(64, 32) + ReLU ----
    h2 = jnp.dot(h1, w2_ref[...], preferred_element_type=jnp.float32)
    h2 = jnp.maximum(h2 + b2_ref[...], 0.0)                   # (tb, 32) f32
    # Dropout(0.2): identity at inference.

    # ---- Layer 3: Linear(32, 1) as (1,32) x (tb,32)^T -> (1, tb) (lane-dense) ----
    logits = jax.lax.dot_general(
        w3_ref[...], h2, (((1,), (1,)), ((), ())),
        preferred_element_type=jnp.float32) + b3_ref[...]     # (1, tb) f32

    # ---- Sigmoid (numerically stable; exact reciprocal, epilogue is tiny) ----
    z = jnp.exp(-jnp.abs(logits))
    r = pl.reciprocal(1.0 + z)                                # exact 1/(1+z)
    sig = jnp.where(logits >= 0.0, r, z * r)

    o_ref[0] = sig.astype(o_ref.dtype)                        # unmasked lane-dense store


def _vmem_capacity_bytes():
    try:
        return int(pltpu.get_tpu_info().vmem_capacity_bytes)
    except Exception:
        return 64 * 1024 * 1024   # conservative fallback (v7x per-core VMEM)


def _per_row_vmem_bytes(D, x_itemsize):
    """Per-batch-row VMEM working set: double-buffered x tile, h1 (f32 acc + bf16
    copy), h2 (f32), double-buffered f32 output, small epilogue slack."""
    return 2 * D * x_itemsize + HIDDEN1 * (4 + 2) + HIDDEN2 * 4 + 2 * 4 + 16


def _pick_batch_tile(B, D, x_itemsize):
    """Largest 128-aligned divisor of B (<= 32768) whose per-row working set fits in
    ~45% of this device's VMEM; >=2 grid steps whenever B >= 256 (v7x megacore).
    If B is not a multiple of 128, fall back to a single full-array block."""
    if B % 128 != 0:
        return B                                   # correct, but masked-store fallback
    vmem = _vmem_capacity_bytes()
    budget = int(vmem * 0.45)                      # headroom for weights + compiler scratch
    cap = max(128, budget // _per_row_vmem_bytes(D, x_itemsize))
    tb = min(B, 32768, cap)
    if B >= 256:
        tb = min(tb, B // 2)                       # guarantee >=2 steps: v7x 2-TC sharding
    tb = max(128, (tb // 128) * 128)
    while B % tb:                                  # make tb an exact divisor of B
        tb -= 128
    return max(tb, 128)


def _vmem_limit_bytes(tb, D, x_itemsize, weight_bytes):
    """Actual footprint + ~50% headroom, clamped to [8 MiB, 3/4 of physical VMEM]."""
    vmem = _vmem_capacity_bytes()
    footprint = tb * _per_row_vmem_bytes(D, x_itemsize) + 2 * weight_bytes
    limit = footprint * 3 // 2 + (4 << 20)
    return int(min(max(limit, 8 << 20), vmem * 3 // 4))


def loan_approval_forward(x, params, *, batch_tile=None, use_bf16=True):
    """x: [B, D].  params: w1[D,64] b1[1,64] w2[64,32] b2[1,32] w3[1,32] b3[1,1]."""
    B, D = x.shape

    w1, b1 = params["w1"], params["b1"]
    w2, b2 = params["w2"], params["b2"]
    w3, b3 = params["w3"], params["b3"]

    if use_bf16:
        # Only the (tiny) weights are cast in the wrapper; x keeps its native dtype
        # and is cast in-kernel right before the layer-1 dot.
        w1 = w1.astype(jnp.bfloat16)
        w2 = w2.astype(jnp.bfloat16)
    # Biases and w3 stay f32: they feed the f32 epilogue and are negligible in size.
    b1 = b1.astype(jnp.float32)
    b2 = b2.astype(jnp.float32)
    w3 = w3.astype(jnp.float32)
    b3 = b3.astype(jnp.float32)

    x_itemsize = jnp.dtype(x.dtype).itemsize
    tb = _pick_batch_tile(B, D, x_itemsize) if batch_tile is None else batch_tile
    if tb != B:
        assert tb % 128 == 0, (
            f"batch_tile must be a multiple of 128 for a lane-dense output store "
            f"(got {tb}); pass batch_tile=None or batch_tile=B for small batches")
    assert B % tb == 0, f"batch {B} must be divisible by batch_tile {tb}"
    num_tiles = B // tb

    weight_bytes = (w1.size * w1.dtype.itemsize + w2.size * w2.dtype.itemsize
                    + (b1.size + b2.size + w3.size + b3.size) * 4)
    vmem_limit = _vmem_limit_bytes(tb, D, x_itemsize, weight_bytes)

    flops = 2 * B * (D * HIDDEN1 + HIDDEN1 * HIDDEN2 + HIDDEN2 * OUT)
    bytes_accessed = B * D * x_itemsize + weight_bytes + B * 4
    cost = pl.CostEstimate(flops=int(flops), transcendentals=int(2 * B),
                           bytes_accessed=int(bytes_accessed))

    out = pl.pallas_call(
        _mlp_kernel,
        out_shape=jax.ShapeDtypeStruct((num_tiles, 1, tb), jnp.float32),
        grid_spec=pltpu.PrefetchScalarGridSpec(
            num_scalar_prefetch=0,
            grid=(num_tiles,),
            in_specs=[
                pl.BlockSpec((tb, D), lambda i: (i, 0)),             # x tile (pipelined)
                pl.BlockSpec((D, HIDDEN1), lambda i: (0, 0)),        # w1 (grid-invariant)
                pl.BlockSpec((1, HIDDEN1), lambda i: (0, 0)),        # b1
                pl.BlockSpec((HIDDEN1, HIDDEN2), lambda i: (0, 0)),  # w2
                pl.BlockSpec((1, HIDDEN2), lambda i: (0, 0)),        # b2
                pl.BlockSpec((OUT, HIDDEN2), lambda i: (0, 0)),      # w3 row (1, 32)
                pl.BlockSpec((1, OUT), lambda i: (0, 0)),            # b3 (1, 1)
            ],
            out_specs=pl.BlockSpec((1, 1, tb), lambda i: (i, 0, 0)),  # lane-dense row
        ),
        compiler_params=pltpu.CompilerParams(
            dimension_semantics=("parallel",),    # shards grid steps across TCs on v7x
            vmem_limit_bytes=vmem_limit,
        ),
        cost_estimate=cost,
    )(x, w1, b1, w2, b2, w3, b3)

    return out.reshape(B, OUT)


def init_params(key, input_dim):
    """PyTorch nn.Linear default init: U(-1/sqrt(fan_in), 1/sqrt(fan_in)).
    w1/w2 stored as [in, out]; w3 kept in PyTorch [out, in] layout (1, 32)."""
    ks = jax.random.split(key, 6)

    def lin(kw, kb, fan_in, w_shape, b_shape):
        bound = 1.0 / math.sqrt(fan_in)
        w = jax.random.uniform(kw, w_shape, jnp.float32, -bound, bound)
        b = jax.random.uniform(kb, b_shape, jnp.float32, -bound, bound)
        return w, b

    w1, b1 = lin(ks[0], ks[1], input_dim, (input_dim, HIDDEN1), (1, HIDDEN1))
    w2, b2 = lin(ks[2], ks[3], HIDDEN1, (HIDDEN1, HIDDEN2), (1, HIDDEN2))
    w3, b3 = lin(ks[4], ks[5], HIDDEN2, (OUT, HIDDEN2), (1, OUT))
    return {"w1": w1, "b1": b1, "w2": w2, "b2": b2, "w3": w3, "b3": b3}


def reference_forward(x, p):
    """Pure f32 reference of the PyTorch module (inference)."""
    h1 = jnp.maximum(x @ p["w1"] + p["b1"], 0.0)
    h2 = jnp.maximum(h1 @ p["w2"] + p["b2"], 0.0)
    return jax.nn.sigmoid(h2 @ p["w3"].T + p["b3"])


if __name__ == "__main__":
    key = jax.random.PRNGKey(0)
    k_x, k_x2, k_p = jax.random.split(key, 3)

    input_dim = 16
    params = init_params(k_p, input_dim)

    # Main path: B=256 -> auto tile = 128 (128-aligned, >=2 grid steps): exercises DMA
    # pipelining, the parallel (megacore) axis, and the lane-dense multi-tile store.
    batch = 256
    x = jax.random.normal(k_x, (batch, input_dim), jnp.float32)
    out = jax.block_until_ready(loan_approval_forward(x, params))
    ref = reference_forward(x, params)
    assert out.shape == (batch, 1)
    # tolerance covers bf16 input/weight rounding in layers 1-2
    assert jnp.allclose(out, ref, atol=2e-2, rtol=2e-2), "mismatch vs. reference (B=256)"

    # Fallback path: batch not a multiple of 128 -> single full-array block.
    batch_small = 48
    x_small = jax.random.normal(k_x2, (batch_small, input_dim), jnp.float32)
    out_small = jax.block_until_ready(loan_approval_forward(x_small, params))
    ref_small = reference_forward(x_small, params)
    assert out_small.shape == (batch_small, 1)
    assert jnp.allclose(out_small, ref_small, atol=2e-2, rtol=2e-2), "mismatch (B=48)"

    print("KERNEL_OK")
</pallas_src>

<mosaic_0001>
module attributes {stable_mosaic.version = 11 : i64} {
  func.func @_mlp_kernel(%arg0: i32, %arg1: memref<128x16xf32, #tpu.memory_space<vmem>>, %arg2: memref<16x64xbf16, #tpu.memory_space<vmem>>, %arg3: memref<1x64xf32, #tpu.memory_space<vmem>>, %arg4: memref<64x32xbf16, #tpu.memory_space<vmem>>, %arg5: memref<1x32xf32, #tpu.memory_space<vmem>>, %arg6: memref<1x32xf32, #tpu.memory_space<vmem>>, %arg7: memref<1x1xf32, #tpu.memory_space<vmem>>, %arg8: memref<1x1x128xf32, #tpu.memory_space<vmem>>) attributes {dimension_semantics = [#tpu.dimension_semantics<parallel>], iteration_bounds = array<i64: 2>, scalar_prefetch = 0 : i64, scratch_operands = 0 : i64, tpu.core_type = #tpu.core_type<tc>, window_params = [{transform_indices = @transform_0, window_bounds = array<i64: 128, 16>}, {pipeline_mode = #tpu.pipeline_mode<synchronous>, transform_indices = @transform_1, window_bounds = array<i64: 16, 64>}, {pipeline_mode = #tpu.pipeline_mode<synchronous>, transform_indices = @transform_2, window_bounds = array<i64: 1, 64>}, {pipeline_mode = #tpu.pipeline_mode<synchronous>, transform_indices = @transform_3, window_bounds = array<i64: 64, 32>}, {pipeline_mode = #tpu.pipeline_mode<synchronous>, transform_indices = @transform_4, window_bounds = array<i64: 1, 32>}, {pipeline_mode = #tpu.pipeline_mode<synchronous>, transform_indices = @transform_5, window_bounds = array<i64: 1, 32>}, {pipeline_mode = #tpu.pipeline_mode<synchronous>, transform_indices = @transform_6, window_bounds = array<i64: 1, 1>}, {transform_indices = @transform_7, window_bounds = array<i64: 1, 1, 128>}]} {
    %c0 = arith.constant 0 : index
    %c0_0 = arith.constant 0 : index
    %0 = vector.load %arg1[%c0, %c0_0] : memref<128x16xf32, #tpu.memory_space<vmem>>, vector<128x16xf32>
    %1 = arith.truncf %0 : vector<128x16xf32> to vector<128x16xbf16>
    %c0_1 = arith.constant 0 : index
    %c0_2 = arith.constant 0 : index
    %2 = vector.load %arg2[%c0_1, %c0_2] : memref<16x64xbf16, #tpu.memory_space<vmem>>, vector<16x64xbf16>
    %cst = arith.constant dense<0.000000e+00> : vector<128x64xf32>
    %3 = tpu.matmul %1, %2, %cst {dimension_numbers = #tpu.dot_dimension_numbers<[1], [0], [0], [1], [0, 0, 1, 1], [], []>} : vector<128x16xbf16>, vector<16x64xbf16>, vector<128x64xf32> -> vector<128x64xf32>
    %c0_3 = arith.constant 0 : index
    %c0_4 = arith.constant 0 : index
    %4 = vector.load %arg3[%c0_3, %c0_4] : memref<1x64xf32, #tpu.memory_space<vmem>>, vector<1x64xf32>
    %5 = vector.broadcast %4 : vector<1x64xf32> to vector<128x64xf32>
    %6 = arith.addf %3, %5 : vector<128x64xf32>
    %cst_5 = arith.constant 0.000000e+00 : f32
    %7 = vector.broadcast %cst_5 : f32 to vector<128x64xf32>
    %8 = arith.maximumf %6, %7 : vector<128x64xf32>
    %9 = arith.truncf %8 : vector<128x64xf32> to vector<128x64xbf16>
    %c0_6 = arith.constant 0 : index
    %c0_7 = arith.constant 0 : index
    %10 = vector.load %arg4[%c0_6, %c0_7] : memref<64x32xbf16, #tpu.memory_space<vmem>>, vector<64x32xbf16>
    %cst_8 = arith.constant dense<0.000000e+00> : vector<128x32xf32>
    %11 = tpu.matmul %9, %10, %cst_8 {dimension_numbers = #tpu.dot_dimension_numbers<[1], [0], [0], [1], [0, 0, 1, 1], [], []>} : vector<128x64xbf16>, vector<64x32xbf16>, vector<128x32xf32> -> vector<128x32xf32>
    %c0_9 = arith.constant 0 : index
    %c0_10 = arith.constant 0 : index
    %12 = vector.load %arg5[%c0_9, %c0_10] : memref<1x32xf32, #tpu.memory_space<vmem>>, vector<1x32xf32>
    %13 = vector.broadcast %12 : vector<1x32xf32> to vector<128x32xf32>
    %14 = arith.addf %11, %13 : vector<128x32xf32>
    %cst_11 = arith.constant 0.000000e+00 : f32
    %15 = vector.broadcast %cst_11 : f32 to vector<128x32xf32>
    %16 = arith.maximumf %14, %15 : vector<128x32xf32>
    %c0_12 = arith.constant 0 : index
    %c0_13 = arith.constant 0 : index
    %17 = vector.load %arg6[%c0_12, %c0_13] : memref<1x32xf32, #tpu.memory_space<vmem>>, vector<1x32xf32>
    %cst_14 = arith.constant dense<0.000000e+00> : vector<1x128xf32>
    %18 = tpu.matmul %17, %16, %cst_14 {dimension_numbers = #tpu.dot_dimension_numbers<[1], [1], [0], [0], [0, 0, 1, 0], [], []>} : vector<1x32xf32>, vector<128x32xf32>, vector<1x128xf32> -> vector<1x128xf32>
    %c0_15 = arith.constant 0 : index
    %c0_16 = arith.constant 0 : index
    %19 = vector.load %arg7[%c0_15, %c0_16] : memref<1x1xf32, #tpu.memory_space<vmem>>, vector<1x1xf32>
    %20 = vector.broadcast %19 : vector<1x1xf32> to vector<1x128xf32>
    %21 = arith.addf %18, %20 : vector<1x128xf32>
    %22 = math.absf %21 : vector<1x128xf32>
    %cst_17 = arith.constant 0.000000e+00 : f32
    %23 = vector.broadcast %cst_17 : f32 to vector<1x128xf32>
    %24 = arith.subf %23, %22 : vector<1x128xf32>
    %25 = math.exp %24 : vector<1x128xf32>
    %cst_18 = arith.constant 1.000000e+00 : f32
    %26 = vector.broadcast %cst_18 : f32 to vector<1x128xf32>
    %27 = arith.addf %26, %25 : vector<1x128xf32>
    %28 = tpu.reciprocal %27 : vector<1x128xf32> -> vector<1x128xf32>
    %cst_19 = arith.constant 0.000000e+00 : f32
    %29 = vector.broadcast %cst_19 : f32 to vector<1x128xf32>
    %30 = arith.cmpf oge, %21, %29 : vector<1x128xf32>
    %31 = arith.mulf %25, %28 : vector<1x128xf32>
    %32 = arith.select %30, %28, %31 : vector<1x128xi1>, vector<1x128xf32>
    %c0_20 = arith.constant 0 : index
    %c0_21 = arith.constant 0 : index
    %c0_22 = arith.constant 0 : index
    %33 = vector.load %arg8[%c0_20, %c0_21, %c0_22] : memref<1x1x128xf32, #tpu.memory_space<vmem>>, vector<1x1x128xf32>
    %34 = vector.shape_cast %33 : vector<1x1x128xf32> to vector<1x128xf32>
    %35 = vector.shape_cast %32 : vector<1x128xf32> to vector<1x1x128xf32>
    tpu.vector_store %arg8[%c0_20, %c0_21, %c0_22], %35 {strides = array<i32>} : memref<1x1x128xf32, #tpu.memory_space<vmem>>, vector<1x1x128xf32>,
    return
  }
  func.func @transform_0(%arg0: i32) -> (i32, i32) {
    %c0_i32 = arith.constant 0 : i32
    %c0_i32_0 = arith.constant 0 : i32
    return %arg0, %c0_i32 : i32, i32
  }
  func.func @transform_1(%arg0: i32) -> (i32, i32) {
    %c0_i32 = arith.constant 0 : i32
    %c0_i32_0 = arith.constant 0 : i32
    %c0_i32_1 = arith.constant 0 : i32
    return %c0_i32, %c0_i32_0 : i32, i32
  }
  func.func @transform_2(%arg0: i32) -> (i32, i32) {
    %c0_i32 = arith.constant 0 : i32
    %c0_i32_0 = arith.constant 0 : i32
    %c0_i32_1 = arith.constant 0 : i32
    return %c0_i32, %c0_i32_0 : i32, i32
  }
  func.func @transform_3(%arg0: i32) -> (i32, i32) {
    %c0_i32 = arith.constant 0 : i32
    %c0_i32_0 = arith.constant 0 : i32
    %c0_i32_1 = arith.constant 0 : i32
    return %c0_i32, %c0_i32_0 : i32, i32
  }
  func.func @transform_4(%arg0: i32) -> (i32, i32) {
    %c0_i32 = arith.constant 0 : i32
    %c0_i32_0 = arith.constant 0 : i32
    %c0_i32_1 = arith.constant 0 : i32
    return %c0_i32, %c0_i32_0 : i32, i32
  }
  func.func @transform_5(%arg0: i32) -> (i32, i32) {
    %c0_i32 = arith.constant 0 : i32
    %c0_i32_0 = arith.constant 0 : i32
    %c0_i32_1 = arith.constant 0 : i32
    return %c0_i32, %c0_i32_0 : i32, i32
  }
  func.func @transform_6(%arg0: i32) -> (i32, i32) {
    %c0_i32 = arith.constant 0 : i32
    %c0_i32_0 = arith.constant 0 : i32
    %c0_i32_1 = arith.constant 0 : i32
    return %c0_i32, %c0_i32_0 : i32, i32
  }
  func.func @transform_7(%arg0: i32) -> (i32, i32, i32) {
    %c0_i32 = arith.constant 0 : i32
    %c0_i32_0 = arith.constant 0 : i32
    %c0_i32_1 = arith.constant 0 : i32
    return %arg0, %c0_i32, %c0_i32_0 : i32, i32, i32
  }
}

</mosaic_0001>

<bundles_post_ra>
// kernel: tpu_custom_call.1
= control target key start
LH: loop header
LB: loop body
LE: loop exit
PB: predicated region body
PF: predicated region fallthrough
CT: control target
= control target key end

     0   :  { %s1372_s0 = inlined_call_operand.vmem [shape: f32[256,16], index: 0, kind: input, shape index: {}]   ;;  %s1373_s1 = inlined_call_operand.vmem [shape: bf16[16,64], index: 1, kind: input, shape index: {}]   ;;  %s1374_s2 = inlined_call_operand.vmem [shape: f32[1,64], index: 2, kind: input, shape index: {}]   ;;  %s1375_s3 = inlined_call_operand.vmem [shape: bf16[64,32], index: 3, kind: input, shape index: {}]   ;;  %s1376_s4 = inlined_call_operand.vmem [shape: f32[1,32], index: 4, kind: input, shape index: {}]   ;;  %s1377_s5 = inlined_call_operand.vmem [shape: f32[1,32], index: 5, kind: input, shape index: {}]   ;;  %s1378_s6 = inlined_call_operand.<no memory space> [shape: f32[1,1], index: 6, kind: input, shape index: {}]   ;;  %s1379_s7 = inlined_call_operand.hbm [shape: f32[2,1,128], index: 7, kind: output, shape index: {}]  }
   0x1   :  { %v12_v0 = vstv %s1378_s6 }
   0x2   :  { %13 = vst [vmem:[#allocation2] sm:$0x1] %v12_v0 }
   0x3   :  { %14 = vsyncpa [#allocation4], 0 }
   0x4   :  { %16 = vsyncpa [#allocation4 + $0x1], 0  ;;  %s1179_s26 = smov 0   ;;  %s1181_s27 = smov 0  }
   0x5   :  { %s1183_s28 = smov 0   ;;  %s1185_s29 = smov 0  }
   0x6 LB: > { %s853_s6 = sadd.s32 4294967295, %s1130_s29   ;;  %s854_s30 = sadd.s32 4294967294, %s1130_s29   ;;  %s1130_s29 = sphi %s1185_s29, %s1385_s29   ;;  %s1126_s28 = sphi %s1183_s28, %s1384_s28   ;;  %s1122_s27 = sphi %s1181_s27, %s1383_s27   ;;  %s1118_s26 = sphi %s1179_s26, %s1382_s26  }
   0x7   : > { %s1202_s8 = sadd.s32 1, %s1130_s29   ;;  %s181_s9 = sadd.s32 1, %s1126_s28 }
   0x8   : > { %s178_s10 = ssub.s32 %s1130_s29, %s1202_s8  ;;  %p191_p0 = scmp.ne.s32.totalorder %s1126_s28, %s1122_s27 }
   0x9   : > { %p179_p1 = scmp.eq.s32.totalorder %s178_s10, 0  ;;  %p192_p2 = scmp.eq.s32.totalorder %s853_s6, 1 }
   0xa   : > { %p197_p3 = scmp.ne.s32.totalorder %s1122_s27, %s1118_s26  ;;  %p198_p4 = scmp.eq.s32.totalorder %s854_s30, 1 }
   0xb   : > { %s1212_s11 = scalar_select %p179_p1, %s1126_s28, %s181_s9  }
   0xc   : > { %p1214_p5 = por %p192_p2, %p191_p0  ;;  %p1218_p6 = por %p198_p4, %p197_p3 }
   0xd   : > { %p857_p7 = scmp.ge.s32.totalorder %s1130_s29, 1  ;;  %p243_p8 = scmp.lt.s32.totalorder %s1130_s29, 3 }
   0xf   : > { %p244_p9 = pnand %p857_p7, %p243_p8 }
  0x10   : > { %s1227_s16 = sshll.u32 (!%p244_p9), %s853_s6, 4  ;;  %s272_s21 = sand.u32 (!%p244_p9), 1, %s1122_s27  }
  0x11   : > { %247 = sbr.rel (%p244_p9) target bundleno = 771 (0x303), region = 48  ;;  %p275_p10 = scmp.lt.s32.totalorder (!%p244_p9), %s1227_s16, 31 }
  0x12   : > { %s273_s22 = scalar_lea.vmem (!%p244_p9), [#allocation3], %s272_s21  ;;  %s1337_s6 = scalar_lea.hbm (!%p244_p9), %s1379_s7, %s1227_s16 }
  0x13   : > { %s787_s30 = scalar_lea.sflag (!%p244_p9), [#allocation4], %s272_s21  ;;  %s1135_s10 = smov (!%p244_p9), [#allocation3]  }
  0x14   : > { %s1074_s14 = sshll.u32 (!%p244_p9), %s1135_s10, 4  ;;  %s1075_s14 = int_to_ptr.vmem [resolvable:$false] %s1074_s14 }
  0x15   : > { %s1076_s15 = scalar_lea.vmem (!%p244_p9), %s1075_s14, 32 }
  0x16   : > { %v1061_v1 = vld [vmem:[%s1373_s1] sm:$0xff]   ;;  %v1062_v2 = vld [vmem:[%s1375_s3 + $0x18] sm:$0xff]   ;;  %s276_s19 = scalar_select %p275_p10, %s1227_s16, 31  ;;  %vm320_vm0 = vcmask 130048   ;;  %v1063_v12 = vld [vmem:[%s1375_s3 + $0x10] sm:$0xff]   ;;  %vm505_vm1 = vcmask 523264  }
  0x17   : > { %941 = vmatprep.subr.bf16.mxu1 %v1061_v1  ;;  %v1064_v17 = vld [vmem:[%s1375_s3 + $0x8] sm:$0xff]   ;;  %v1065_v29 = vld [vmem:[%s1375_s3] sm:$0xff]   ;;  %vm1133_vm2 = vmmov 0   ;;  %vm654_vm3 = vcmask 261120  }
  0x18   : > { %942 = vmatpush3.bf16.msra.mxu1 %v1061_v1  ;;  %s859_s20 = sshll.u32 %s276_s19, 3  ;;  %v860_v32 = vld [vmem:[%s1374_s2] ss:$0 sm:$0xff] }
  0x19   : > { %959 = vmatprep.subr.bf16.mxu1 %v1062_v2  ;;  %s1237_s23 = scalar_lea.vmem %s1372_s0, %s859_s20 }
  0x1a   : > { %v281_v3 = vld [vmem:[%s1237_s23] sm:$0xff]  ;;  %v282_v4 = vld [vmem:[%s1237_s23 + $0x8] sm:$0xff]  ;;  %v283_v5 = vld [vmem:[%s1237_s23 + $0x10] sm:$0xff] }
  0x1b   : > { %v297_v6 = vpack.c.bf16 %v282_v4, %v281_v3  ;;  %v284_v7 = vld [vmem:[%s1237_s23 + $0x18] sm:$0xff]  ;;  %v285_v8 = vld [vmem:[%s1237_s23 + $0x20] sm:$0xff]  ;;  %v286_v9 = vld [vmem:[%s1237_s23 + $0x28] sm:$0xff] }
  0x1c   : > { %v298_v10 = vpack.c.bf16 %v284_v7, %v283_v5  ;;  %v299_v11 = vpack.c.bf16 %v286_v9, %v285_v8  ;;  %v287_v13 = vld [vmem:[%s1237_s23 + $0x30] sm:$0xff]  ;;  %v288_v14 = vld [vmem:[%s1237_s23 + $0x38] sm:$0xff]  ;;  %v289_v15 = vld [vmem:[%s1237_s23 + $0x40] sm:$0xff] }
  0x1d   : > { %943 = vmatprep.mubr.msk.bf16.mxu1 %vm320_vm0, %v297_v6  ;;  %v290_v16 = vld [vmem:[%s1237_s23 + $0x48] sm:$0xff]  ;;  %v300_v18 = vpack.c.bf16 %v288_v14, %v287_v13  ;;  %v291_v20 = vld [vmem:[%s1237_s23 + $0x50] sm:$0xff]  ;;  %v292_v21 = vld [vmem:[%s1237_s23 + $0x58] sm:$0xff] }
  0x1e   : > { %944 = vmatmul.mubr.msk.bf16.vlgmr.msra.gmra.mxu1 %vm320_vm0, %v298_v10  ;;  %v301_v19 = vpack.c.bf16 %v290_v16, %v289_v15  ;;  %v293_v22 = vld [vmem:[%s1237_s23 + $0x60] sm:$0xff]  ;;  %v294_v23 = vld [vmem:[%s1237_s23 + $0x68] sm:$0xff]  ;;  %v302_v24 = vpack.c.bf16 %v292_v21, %v291_v20  ;;  %v295_v26 = vld [vmem:[%s1237_s23 + $0x70] sm:$0xff] }
  0x1f   : > { %947 = vmatprep.mubr.msk.bf16.mxu1 %vm320_vm0, %v299_v11  ;;  %960 = vmatpush3.bf16.msra.mxu1 %v1062_v2  ;;  %v303_v25 = vpack.c.bf16 %v294_v23, %v293_v22  ;;  %v296_v27 = vld [vmem:[%s1237_s23 + $0x78] sm:$0xff]  ;;  %v1132_v23 = vmov 0.0   ;;  %s799_s23 = sshll.u32 %s273_s22, 4  ;;  %s800_s23 = int_to_ptr.vmem [resolvable:$true] %s799_s23 }
  0x20   : > { %961 = vmatprep.subr.bf16.mxu1 %v1063_v12  ;;  %v304_v28 = vpack.c.bf16 %v296_v27, %v295_v26  ;;  %983 = vmatprep.subr.mxu0 %v1132_v23  ;;  %s1070_s9 = scalar_lea.vmem %s800_s23, 16  ;;  %p1077_p0 = scmp.lt.s32.totalorder %s800_s23, %s1075_s14 }
  0x21   : > { %1015 = vmatprep.mubr.msk.f32.mxu0 %vm1133_vm2, %v1132_v23  ;;  %p1071_p11 = scmp.ne.s32.totalorder %s800_s23, %s1070_s9  ;;  %p1078_p1 = scmp.lt.s32.totalorder %s1076_s15, %s1070_s9 }
  0x23   : > { %962 = vmatpush3.bf16.msra.mxu1 %v1063_v12  ;;  %p1072_p12 = pnand %p1071_p11, %p1214_p5  ;;  %p1079_p2 = por %p1078_p1, %p1077_p0 }
  0x24   : > { %963 = vmatprep.subr.bf16.mxu1 %v1064_v17 }
  0x25   : > { %p1073_p13 = pneg %p1072_p12 }
  0x26   : > { %948 = vmatmul.mubr.msk.bf16.gmra.mxu1 %vm320_vm0, %v300_v18 }
  0x27   : > { %951 = vmatprep.mubr.msk.bf16.mxu1 %vm320_vm0, %v301_v19  ;;  %964 = vmatpush3.bf16.msra.mxu1 %v1064_v17  ;;  %p1080_p3 = pnand %p1079_p2, %p1073_p13 }
  0x28   : > { %965 = vmatprep.subr.bf16.mxu1 %v1065_v29 }
  0x2b   : > { %966 = vmatpush3.bf16.msra.mxu1 %v1065_v29 }
  0x2e   : > { %952 = vmatmul.mubr.msk.bf16.gmra.mxu1 %vm320_vm0, %v302_v24  ;;  %v644_v24 = vld [vmem:[#allocation2] sm:$0x1] }
  0x2f   : > { %955 = vmatprep.mubr.msk.bf16.mxu1 %vm320_vm0, %v303_v25  ;;  %v1134_v25 = vmov 0  }
  0x30   : > { %1060 = vset.pattern.permute.xlu0 %v1134_v25 }
  0x31   : > { %647 = vperm.xlu0 %1060, %v644_v24  }
  0x36   : > { %956 = vmatmul.mubr.msk.bf16.gmra.mxu1 %vm320_vm0, %v304_v28 }
  0xde   : > { %v945_v30 = vpop.f32.mrf.mxu1 }
  0xdf   : > { %v388_v36 = vadd.f32 %v945_v30, %v860_v32 }
  0xe0   : > { %v379_v31 = vpop.f32.mrf.mxu1 }
  0xe1   : > { %v380_v34 = vadd.f32 %v860_v32, %v379_v31  ;;  %v444_v43 = vmax.f32 %v388_v36, 0.0 }
  0xe2   : > { %v946_v33 = vpop.f32.mrf.mxu1 }
  0xe3   : > { %v391_v35 = vadd.f32 %v946_v33, %v860_v32  ;;  %v442_v41 = vmax.f32 %v380_v34, 0.0 }
  0xe4   : > { %v382_v37 = vpop.f32.mrf.mxu1 }
  0xe5   : > { %v383_v38 = vadd.f32 %v860_v32, %v382_v37  ;;  %v445_v39 = vmax.f32 %v391_v35, 0.0 }
  0xe6   : > { %v949_v40 = vpop.f32.mrf.mxu1 }
  0xe7   : > { %v443_v42 = vmax.f32 %v383_v38, 0.0  ;;  %v459_v46 = vpack.c.bf16 %v445_v39, %v444_v43  ;;  %v404_v50 = vadd.f32 %v949_v40, %v860_v32  ;;  %v870_v40 = vld [vmem:[%s1376_s4] ss:$0 sm:$0xff] }
  0xe8   : > { %v395_v44 = vpop.f32.mrf.mxu1 }
  0xe9   : > { %v458_v45 = vpack.c.bf16 %v443_v42, %v442_v41  ;;  %v396_v48 = vadd.f32 %v860_v32, %v395_v44  ;;  %v448_v57 = vmax.f32 %v404_v50, 0.0 }
  0xea   : > { %v950_v47 = vpop.f32.mrf.mxu1 }
  0xeb   : > { %v407_v49 = vadd.f32 %v950_v47, %v860_v32  ;;  %967 = vmatprep.mubr.msk.bf16.mxu1 %vm505_vm1, %v458_v45  ;;  %v446_v55 = vmax.f32 %v396_v48, 0.0 }
  0xec   : > { %v398_v51 = vpop.f32.mrf.mxu1  ;;  %968 = vmatmul.mubr.msk.bf16.vlgmr.msra.gmra.mxu1 %vm505_vm1, %v459_v46 }
  0xed   : > { %v399_v52 = vadd.f32 %v860_v32, %v398_v51  ;;  %v449_v53 = vmax.f32 %v407_v49, 0.0 }
  0xee   : > { %v953_v54 = vpop.f32.mrf.mxu1 }
  0xef   : > { %v447_v56 = vmax.f32 %v399_v52, 0.0  ;;  %v461_v60 = vpack.c.bf16 %v449_v53, %v448_v57  ;;  %v420_v0 = vadd.f32 %v953_v54, %v860_v32 }
  0xf0   : > { %v411_v58 = vpop.f32.mrf.mxu1 }
  0xf1   : > { %v460_v59 = vpack.c.bf16 %v447_v56, %v446_v55  ;;  %v412_v62 = vadd.f32 %v860_v32, %v411_v58  ;;  %v452_v7 = vmax.f32 %v420_v0, 0.0 }
  0xf2   : > { %v954_v61 = vpop.f32.mrf.mxu1 }
  0xf3   : > { %v423_v63 = vadd.f32 %v954_v61, %v860_v32  ;;  %971 = vmatprep.mubr.msk.bf16.mxu1 %vm505_vm1, %v460_v59  ;;  %v450_v5 = vmax.f32 %v412_v62, 0.0 }
  0xf4   : > { %v414_v1 = vpop.f32.mrf.mxu1  ;;  %972 = vmatmul.mubr.msk.bf16.gmra.mxu1 %vm505_vm1, %v461_v60 }
  0xf5   : > { %v415_v2 = vadd.f32 %v860_v32, %v414_v1  ;;  %v453_v3 = vmax.f32 %v423_v63, 0.0 }
  0xf6   : > { %v957_v4 = vpop.f32.mrf.mxu1 }
  0xf7   : > { %v451_v6 = vmax.f32 %v415_v2, 0.0  ;;  %v463_v10 = vpack.c.bf16 %v453_v3, %v452_v7  ;;  %v436_v14 = vadd.f32 %v957_v4, %v860_v32 }
  0xf8   : > { %v427_v8 = vpop.f32.mrf.mxu1 }
  0xf9   : > { %v462_v9 = vpack.c.bf16 %v451_v6, %v450_v5  ;;  %v428_v12 = vadd.f32 %v860_v32, %v427_v8  ;;  %v456_v20 = vmax.f32 %v436_v14, 0.0 }
  0xfa   : > { %v958_v11 = vpop.f32.mrf.mxu1 }
  0xfb   : > { %v439_v13 = vadd.f32 %v958_v11, %v860_v32  ;;  %975 = vmatprep.mubr.msk.bf16.mxu1 %vm505_vm1, %v462_v9  ;;  %v454_v18 = vmax.f32 %v428_v12, 0.0  ;;  %v643_v11 = vld [vmem:[%s1377_s5] sm:$0x1]  ;;  %v650_v12 = vlaneseq }
  0xfc   : > { %v430_v15 = vpop.f32.mrf.mxu1  ;;  %976 = vmatmul.mubr.msk.bf16.gmra.mxu1 %vm505_vm1, %v463_v10 }
  0xfd   : > { %v431_v16 = vadd.f32 %v860_v32, %v430_v15  ;;  %v457_v17 = vmax.f32 %v439_v13, 0.0  ;;  %v651_v13 = vshrl.u32 %v650_v12, 7  ;;  %v648_v15 = vpop.permute.xlu0 %647 }
  0xff   : > { %v455_v19 = vmax.f32 %v431_v16, 0.0  ;;  %v465_v22 = vpack.c.bf16 %v457_v17, %v456_v20  ;;  %v652_v14 = vsub.s32 0, %v651_v13 }
 0x101   : > { %v464_v21 = vpack.c.bf16 %v455_v19, %v454_v18  ;;  %v653_v16 = vrot.slane %v648_v15, %v652_v14 }
 0x103   : > { %979 = vmatprep.mubr.msk.bf16.mxu1 %vm505_vm1, %v464_v21 }
 0x104   : > { %980 = vmatmul.mubr.msk.bf16.gmra.mxu1 %vm505_vm1, %v465_v22 }
 0x1ac   : > { %v1285_v26 = vpop.f32.mrf.mxu1 }
 0x1ad   : > { %v573_v4 = vadd.f32 %v1285_v26, %v870_v40 }
 0x1ae   : > { %v1287_v27 = vpop.f32.mrf.mxu1 }
 0x1af   : > { %v629_v6 = vmax.f32 %v573_v4, 0.0  ;;  %v565_v8 = vadd.f32 %v870_v40, %v1287_v27 }
 0x1b0   : > { %v970_v28 = vpop.f32.mrf.mxu1 }
 0x1b1   : > { %v576_v2 = vadd.f32 %v970_v28, %v870_v40  ;;  %v627_v10 = vmax.f32 %v565_v8, 0.0 }
 0x1b2   : > { %v1289_v29 = vpop.f32.mrf.mxu1 }
 0x1b3   : > { %v630_v5 = vmax.f32 %v576_v2, 0.0  ;;  %v568_v7 = vadd.f32 %v870_v40, %v1289_v29 }
 0x1b4   : > { %v973_v30 = vpop.f32.mrf.mxu1 }
 0x1b5   : > { %v589_v60 = vadd.f32 %v973_v30, %v870_v40  ;;  %v628_v9 = vmax.f32 %v568_v7, 0.0 }
 0x1b6   : > { %v580_v31 = vpop.f32.mrf.mxu1 }
 0x1b7   : > { %v633_v62 = vmax.f32 %v589_v60, 0.0  ;;  %v581_v0 = vadd.f32 %v870_v40, %v580_v31 }
 0x1b8   : > { %v974_v32 = vpop.f32.mrf.mxu1 }
 0x1b9   : > { %v592_v58 = vadd.f32 %v974_v32, %v870_v40  ;;  %v631_v3 = vmax.f32 %v581_v0, 0.0 }
 0x1ba   : > { %v583_v33 = vpop.f32.mrf.mxu1 }
 0x1bb   : > { %v634_v61 = vmax.f32 %v592_v58, 0.0  ;;  %v584_v63 = vadd.f32 %v870_v40, %v583_v33 }
 0x1bc   : > { %v977_v34 = vpop.f32.mrf.mxu1 }
 0x1bd   : > { %v605_v52 = vadd.f32 %v977_v34, %v870_v40  ;;  %v632_v1 = vmax.f32 %v584_v63, 0.0 }
 0x1be   : > { %v596_v35 = vpop.f32.mrf.mxu1 }
 0x1bf   : > { %v637_v54 = vmax.f32 %v605_v52, 0.0  ;;  %v597_v56 = vadd.f32 %v870_v40, %v596_v35 }
 0x1c0   : > { %v978_v36 = vpop.f32.mrf.mxu1 }
 0x1c1   : > { %v608_v50 = vadd.f32 %v978_v36, %v870_v40  ;;  %v635_v59 = vmax.f32 %v597_v56, 0.0 }
 0x1c2   : > { %v599_v37 = vpop.f32.mrf.mxu1 }
 0x1c3   : > { %v638_v53 = vmax.f32 %v608_v50, 0.0  ;;  %v600_v55 = vadd.f32 %v870_v40, %v599_v37 }
 0x1c4   : > { %v981_v38 = vpop.f32.mrf.mxu1 }
 0x1c5   : > { %v621_v43 = vadd.f32 %v981_v38, %v870_v40  ;;  %v636_v57 = vmax.f32 %v600_v55, 0.0 }
 0x1c6   : > { %v612_v39 = vpop.f32.mrf.mxu1 }
 0x1c7   : > { %v641_v46 = vmax.f32 %v621_v43, 0.0  ;;  %v613_v48 = vadd.f32 %v870_v40, %v612_v39 }
 0x1c8   : > { %v982_v41 = vpop.f32.mrf.mxu1 }
 0x1c9   : > { %v624_v42 = vadd.f32 %v982_v41, %v870_v40  ;;  %v639_v51 = vmax.f32 %v613_v48, 0.0 }
 0x1ca   : > { %v615_v45 = vpop.f32.mrf.mxu1 }
 0x1cb   : > { %v642_v44 = vmax.f32 %v624_v42, 0.0  ;;  %v616_v47 = vadd.f32 %v870_v40, %v615_v45 }
 0x1cd   : > { %984 = vmatpush3.xpose.msk.msra.mxu0 %vm654_vm3, %v642_v44  ;;  %v640_v49 = vmax.f32 %v616_v47, 0.0 }
 0x1ce   : > { %985 = vmatprep.subr.mxu0 %v1132_v23 }
 0x1d1   : > { %986 = vmatpush3.xpose.msk.msra.mxu0 %vm654_vm3, %v641_v46 }
 0x1d2   : > { %987 = vmatprep.subr.mxu0 %v1132_v23 }
 0x1d5   : > { %988 = vmatpush3.xpose.msk.msra.mxu0 %vm654_vm3, %v640_v49 }
 0x1d6   : > { %989 = vmatprep.subr.mxu0 %v1132_v23 }
 0x1d9   : > { %990 = vmatpush3.xpose.msk.msra.mxu0 %vm654_vm3, %v639_v51 }
 0x1da   : > { %991 = vmatprep.subr.mxu0 %v1132_v23 }
 0x1dd   : > { %992 = vmatpush3.xpose.msk.msra.mxu0 %vm654_vm3, %v638_v53 }
 0x1de   : > { %993 = vmatprep.subr.mxu0 %v1132_v23 }
 0x1e1   : > { %994 = vmatpush3.xpose.msk.msra.mxu0 %vm654_vm3, %v637_v54 }
 0x1e2   : > { %995 = vmatprep.subr.mxu0 %v1132_v23 }
 0x1e5   : > { %996 = vmatpush3.xpose.msk.msra.mxu0 %vm654_vm3, %v636_v57 }
 0x1e6   : > { %997 = vmatprep.subr.mxu0 %v1132_v23 }
 0x1e9   : > { %998 = vmatpush3.xpose.msk.msra.mxu0 %vm654_vm3, %v635_v59 }
 0x1ea   : > { %999 = vmatprep.subr.mxu0 %v1132_v23 }
 0x1ed   : > { %1000 = vmatpush3.xpose.msk.msra.mxu0 %vm654_vm3, %v634_v61 }
 0x1ee   : > { %1001 = vmatprep.subr.mxu0 %v1132_v23 }
 0x1f1   : > { %1002 = vmatpush3.xpose.msk.msra.mxu0 %vm654_vm3, %v633_v62 }
 0x1f2   : > { %1003 = vmatprep.subr.mxu0 %v1132_v23 }
 0x1f5   : > { %1004 = vmatpush3.xpose.msk.msra.mxu0 %vm654_vm3, %v632_v1 }
 0x1f6   : > { %1005 = vmatprep.subr.mxu0 %v1132_v23 }
 0x1f9   : > { %1006 = vmatpush3.xpose.msk.msra.mxu0 %vm654_vm3, %v631_v3 }
 0x1fa   : > { %1007 = vmatprep.subr.mxu0 %v1132_v23 }
 0x1fd   : > { %1008 = vmatpush3.xpose.msk.msra.mxu0 %vm654_vm3, %v630_v5 }
 0x1fe   : > { %1009 = vmatprep.subr.mxu0 %v1132_v23 }
 0x201   : > { %1010 = vmatpush3.xpose.msk.msra.mxu0 %vm654_vm3, %v629_v6 }
 0x202   : > { %1011 = vmatprep.subr.mxu0 %v1132_v23 }
 0x205   : > { %1012 = vmatpush3.xpose.msk.msra.mxu0 %vm654_vm3, %v628_v9 }
 0x206   : > { %1013 = vmatprep.subr.mxu0 %v1132_v23 }
 0x209   : > { %1014 = vmatpush3.xpose.msk.msra.mxu0 %vm654_vm3, %v627_v10 }
 0x20c   : > { %1016 = vmatmul.mubr.msk.f32.vlgmr.msra.gmra.mxu0 %vm654_vm3, %v643_v11 }
 0x2cc   : > { %v772_v17 = vpop.f32.mrf.mxu0 }
 0x2cd   : > { %v773_v18 = vadd.f32 %v772_v17, %v653_v16 }
 0x2ce   : > { %v1017_v19 = vpop.f32.mrf.mxu0 }
 0x2cf   : > { %v776_v20 = vand.u32 2147483647, %v773_v18  ;;  %vm782_vm4 = vcmp.ge.f32.partialorder %v773_v18, 0.0 }
 0x2d1   : > { %v777_v21 = vsub.f32 0.0, %v776_v20 }
 0x2d3   : > { %v778_v22 = vmul.f32 1.442695, %v777_v21 }
 0x2d5   : > { %1066 = vpow2.f32 %v778_v22 }
 0x2e2   : > { %v1067_v23 = vpop.eup %1066 }
 0x2e3   : > { %v780_v24 = vadd.f32 1.0, %v1067_v23 }
 0x2e5   : > { %1068 = vrcp.f32 %v780_v24 }
 0x2f2   : > { %v1069_v25 = vpop.eup %1068 }
 0x2f3   : > { %v783_v26 = vmul.f32 %v1069_v25, %v1067_v23 }
 0x2f5   : > { %v784_v27 = vsel %vm782_vm4, %v1069_v25, %v783_v26 }
 0x2f6   : > { %785 = vst [vmem:[%s273_s22] sm:$0x1] %v784_v27 }
 0x2f7   : > { %1083 = shalt.err (!%p1080_p3)
}
 0x2f8   : > { %s1084_s16 = scalar_lea.hbm %s1337_s6, 16  ;;  %s1088_s19 = scalar_lea.hbm %s1379_s7, 32 }
 0x2f9   : > { %p1085_p4 = scmp.ne.s32.totalorder %s1337_s6, %s1084_s16  ;;  %p1089_p9 = scmp.lt.s32.totalorder %s1337_s6, %s1379_s7 }
 0x2fa   : > { %p1090_p10 = scmp.lt.s32.totalorder %s1088_s19, %s1084_s16 }
 0x2fb   : > { %p1086_p7 = pnand %p1085_p4, %p1214_p5 }
 0x2fc   : > { %p1091_p11 = por %p1090_p10, %p1089_p9 }
 0x2fd   : > { %p1087_p8 = pneg %p1086_p7 }
 0x2ff   : > { %p1092_p12 = pnand %p1091_p11, %p1087_p8 }
 0x301   : > { %1095 = shalt.err (!%p1092_p12)
}
 0x302   : > { %1018 = dma.vmem_to_hbm [thread:$0]  (%p1214_p5), %s800_s23, 16, %s1337_s6, %s787_s30  }
 0x303 PF: > { %p1024_p13 = scmp.ge.s32.totalorder %s1130_s29, 2  ;;  %s811_s22 = sand.u32 1, %s1118_s26  }
 0x304   : > { %s812_s24 = scalar_lea.sflag [#allocation4], %s811_s22 }
 0x305   : > { %p1021_p0 = pnand %p1024_p13, %p1218_p6 }
 0x307   : > { %p1022_p1 = pneg %p1021_p0 }
 0x309   : > { %1113 = dma.done.wait (%p1022_p1), %s812_s24, 16  }
 0x30a   : > { %1115 = vsyncadd (%p1022_p1), %s812_s24, 4294967280  ;;  %p19_p2 = scmp.ge.s32.totalorder %s1202_s8, 4   ;;  %s1382_s26 = smov %s1122_s27 }
 0x30b   : > { %s1383_s27 = smov %s1126_s28  ;;  %s1384_s28 = smov %s1212_s11 }
 0x30c   : > { %s1385_s29 = smov %s1202_s8  ;;  %21 = sbr.rel (!%p19_p2) target bundleno = 6 (0x6), region = 83 }
 0x311   :  { %816 = vsyncpa [#allocation4], 1 }
 0x312   :  { %818 = vsyncpa [#allocation4 + $0x1], 1 }

</bundles_post_ra>
